<compile_context>
chip_gen: v7x
topology: tpu7x:2x2x1
jax: 0.10.0
libtpu: 0.0.40
codegen_flags: <defaults>
</compile_context>

<pallas_src>
import math

import jax
import jax.numpy as jnp
from jax.experimental import pallas as pl
from jax.experimental.pallas import tpu as pltpu

MAX_BONDS = 6


# ----------------------------------------------------------------------------
# Fused Pallas kernel:
#   embeddings (gather+sum) -> MLP (5 per-token linears, flattened over B*L)
#   -> per-batch adjacency from bond indices -> A @ msg -> residual
# Token layout is batch-major flat: t = b*L + l ; tokens on sublanes, features
# on lanes. Output is [L, B*D] (batch blocks packed along lanes).
# ----------------------------------------------------------------------------
def atom_encoder_kernel(elem_ids_ref, aroma_ids_ref, charge_ids_ref,
                        seg_ids_ref, react_ids_ref, bond_ref, pe_ref,
                        elem_tab_ref, charge_tab_ref, aroma_tab_ref,
                        react_tab_ref, seg_tab_ref,
                        w1_ref, b1_ref, w2_ref, b2_ref,
                        w3_ref, b3_ref, w4_ref, b4_ref,
                        w5_ref, b5_ref,
                        out_ref):
    L, D = pe_ref.shape
    T = elem_ids_ref.shape[0]          # T = B * L (flattened tokens)
    B = T // L

    def onehot_gather(ids_col, tab_ref):
        # Exact embedding lookup as a one-hot matmul (MXU); ids_col: [T, 1].
        table = tab_ref[...]                                   # [n, D]
        n = table.shape[0]
        iota = jax.lax.broadcasted_iota(jnp.int32, (T, n), 1)
        onehot = (ids_col == iota).astype(jnp.float32)         # [T, n]
        return jnp.dot(onehot, table, preferred_element_type=jnp.float32)

    def binary_gather(ids_col, tab_ref):
        # 2-row tables (aroma / reactant): exact VPU select, no MXU push.
        table = tab_ref[...]                                   # [2, D]
        return jnp.where(ids_col == 1, table[1:2, :], table[0:1, :])

    # --- summed embeddings (fused; no HBM round trip) -------------------------
    x = onehot_gather(elem_ids_ref[...], elem_tab_ref)
    x = x + jnp.concatenate([pe_ref[...]] * B, axis=0)         # pos enc per batch
    x = x + binary_gather(aroma_ids_ref[...], aroma_tab_ref)
    x = x + onehot_gather(charge_ids_ref[...], charge_tab_ref)
    x = x + onehot_gather(seg_ids_ref[...], seg_tab_ref)
    x = x + binary_gather(react_ids_ref[...], react_tab_ref)
    emb = x                                                    # [T, D]

    # --- MLP (Conv1d kernel-size-1 == per-token linear), flattened over T ----
    h = jnp.maximum(
        jnp.dot(emb, w1_ref[...], preferred_element_type=jnp.float32) + b1_ref[...], 0.0)
    x1 = emb + jnp.dot(h, w2_ref[...], preferred_element_type=jnp.float32) + b2_ref[...]
    h = jnp.maximum(
        jnp.dot(x1, w3_ref[...], preferred_element_type=jnp.float32) + b3_ref[...], 0.0)
    x2 = x1 + jnp.dot(h, w4_ref[...], preferred_element_type=jnp.float32) + b4_ref[...]
    msg = jnp.dot(x2, w5_ref[...], preferred_element_type=jnp.float32) + b5_ref[...]  # [T, D]

    # --- adjacency from bond indices + neighbor aggregation (per batch) ------
    # A[k, j] = #{ m : bond[k, m] == j }  with the diagonal zeroed, the mask is
    # folded into the compares (no separate where pass over [L, L]).
    bond = bond_ref[...]                                       # [T, MAX_BONDS]
    jj = jax.lax.broadcasted_iota(jnp.int32, (L, L), 1)
    kk = jax.lax.broadcasted_iota(jnp.int32, (L, L), 0)
    off_diag = kk != jj

    outs = []
    for b in range(B):                                         # static unroll
        lo, hi = b * L, (b + 1) * L
        bond_b = bond[lo:hi, :]                                # [L, MAX_BONDS]
        A = jnp.zeros((L, L), jnp.float32)
        for m in range(MAX_BONDS):                             # static unroll (6)
            col = bond_b[:, m:m + 1]                           # [L, 1]
            A = A + ((col == jj) & off_diag).astype(jnp.float32)
        agg = jnp.dot(A, msg[lo:hi, :], preferred_element_type=jnp.float32)
        outs.append(emb[lo:hi, :] + agg)                       # [L, D]

    # single lane-dense store: batches packed side-by-side along lanes
    out_ref[...] = jnp.concatenate(outs, axis=1)               # [L, B*D]


def atom_encoder_pallas(params, element, bond, aroma, charge, segment,
                        reactant_mask=None):
    """Returns [L, B, D] f32 (same convention as the PyTorch module)."""
    B, L = element.shape
    D = params["pe"].shape[1]
    T = B * L

    elem_ids = element.reshape(T, 1).astype(jnp.int32)         # t = b*L + l
    aroma_ids = aroma.reshape(T, 1).astype(jnp.int32)
    charge_ids = (charge + 6).reshape(T, 1).astype(jnp.int32)
    seg_ids = segment.reshape(T, 1).astype(jnp.int32)
    if reactant_mask is None:
        react_ids = jnp.zeros((T, 1), jnp.int32)
        react_tab = jnp.zeros_like(params["reactant_emb"])     # identity skip
    else:
        react_ids = reactant_mask.reshape(T, 1).astype(jnp.int32)
        react_tab = params["reactant_emb"]
    bond_flat = bond.reshape(T, MAX_BONDS).astype(jnp.int32)
    pe_l = params["pe"][:L]                                    # [L, D]

    inputs = (elem_ids, aroma_ids, charge_ids, seg_ids, react_ids, bond_flat,
              pe_l,
              params["element_emb"], params["charge_emb"], params["aroma_emb"],
              react_tab, params["segment_emb"],
              *params["mlp"])

    vmem = pl.BlockSpec(memory_space=pltpu.MemorySpace.VMEM)
    out2d = pl.pallas_call(
        atom_encoder_kernel,
        out_shape=jax.ShapeDtypeStruct((L, B * D), jnp.float32),
        in_specs=[vmem] * len(inputs),
        out_specs=vmem,
    )(*inputs)

    # free reshape (contiguous): [L, B*D] -> [L, B, D]; no XLA transpose needed
    return out2d.reshape(L, B, D)


# ----------------------------------------------------------------------------
# Parameter construction (deterministic)
# ----------------------------------------------------------------------------
def make_params(key, ntoken, dim, max_len=150):
    keys = jax.random.split(key, 16)

    def emb(k, n):
        return jax.random.normal(k, (n, dim), dtype=jnp.float32)

    def linear(k, din, dout):
        scale = 1.0 / math.sqrt(din)
        kw, kb = jax.random.split(k)
        w = jax.random.uniform(kw, (din, dout), jnp.float32, -scale, scale)
        b = jax.random.uniform(kb, (1, dout), jnp.float32, -scale, scale)
        return w, b

    # sinusoidal positional encoding (PositionalEncoding.__init__)
    position = jnp.arange(max_len, dtype=jnp.float32)[:, None]
    div_term = jnp.exp(jnp.arange(0, dim, 2, dtype=jnp.float32)
                       * (-math.log(10000.0) / dim))
    pe = jnp.zeros((max_len, dim), jnp.float32)
    pe = pe.at[:, 0::2].set(jnp.sin(position * div_term))
    pe = pe.at[:, 1::2].set(jnp.cos(position * div_term))

    params = dict(
        pe=pe,
        element_emb=emb(keys[0], ntoken),
        charge_emb=emb(keys[1], 13),
        aroma_emb=emb(keys[2], 2),
        reactant_emb=emb(keys[3], 2),
        segment_emb=emb(keys[4], 30),
    )
    w1, b1 = linear(keys[5], dim, 4 * dim)
    w2, b2 = linear(keys[6], 4 * dim, dim)
    w3, b3 = linear(keys[7], dim, 4 * dim)
    w4, b4 = linear(keys[8], 4 * dim, dim)
    w5, b5 = linear(keys[9], dim, dim)
    params["mlp"] = (w1, b1, w2, b2, w3, b3, w4, b4, w5, b5)
    return params


@jax.jit
def atom_encoder_forward(params, element, bond, aroma, charge, segment,
                         reactant_mask):
    return atom_encoder_pallas(params, element, bond, aroma, charge, segment,
                               reactant_mask)


# ----------------------------------------------------------------------------
# Pure-JAX reference (mirrors the PyTorch forward, eval mode) for correctness
# ----------------------------------------------------------------------------
def atom_encoder_reference(params, element, bond, aroma, charge, segment,
                           reactant_mask):
    b_, l = element.shape
    emb = params["element_emb"][element]                        # [B, L, D]
    emb = emb + params["pe"][:l][None, :, :]                    # dropout = eval
    emb = emb + params["aroma_emb"][aroma]
    emb = emb + params["charge_emb"][charge + 6]
    emb = emb + params["segment_emb"][segment]
    if reactant_mask is not None:
        emb = emb + params["reactant_emb"][reactant_mask]

    (w1, b1, w2, b2, w3, b3, w4, b4, w5, b5) = params["mlp"]
    x = emb
    h = jax.nn.relu(x @ w1 + b1)
    x = x + (h @ w2 + b2)
    h = jax.nn.relu(x @ w3 + b3)
    x = x + (h @ w4 + b4)
    msg = x @ w5 + b5                                           # [B, L, D]

    eye = jnp.eye(l, dtype=jnp.float32)
    A = jax.nn.one_hot(bond, l, dtype=jnp.float32).sum(axis=2)  # [B, L, L]
    A = A * (1.0 - eye)
    agg = jnp.einsum("bkl,bld->bkd", A, msg)
    out = emb + agg
    return out.transpose(1, 0, 2)                               # [L, B, D]


if __name__ == "__main__":
    NTOKEN, DIM = 20, 32
    B, L = 2, 16

    key = jax.random.PRNGKey(0)
    pkey, k1, k2, k3, k4, k5, k6 = jax.random.split(key, 7)
    params = make_params(pkey, NTOKEN, DIM)

    element = jax.random.randint(k1, (B, L), 0, NTOKEN, dtype=jnp.int32)
    bond = jax.random.randint(k2, (B, L, MAX_BONDS), 0, L, dtype=jnp.int32)
    aroma = jax.random.randint(k3, (B, L), 0, 2, dtype=jnp.int32)
    charge = jax.random.randint(k4, (B, L), -2, 3, dtype=jnp.int32)
    segment = jax.random.randint(k5, (B, L), 0, 30, dtype=jnp.int32)
    reactant_mask = jax.random.randint(k6, (B, L), 0, 2, dtype=jnp.int32)

    out = atom_encoder_forward(params, element, bond, aroma, charge, segment,
                               reactant_mask)
    out = jax.block_until_ready(out)

    ref = atom_encoder_reference(params, element, bond, aroma, charge, segment,
                                 reactant_mask)
    assert out.shape == (L, B, DIM), out.shape
    assert jnp.allclose(out, ref, rtol=1e-4, atol=1e-4), "mismatch vs reference"

    # TODO(synk): nn.Dropout on the positional encoding is eval-mode identity here.
    print("KERNEL_OK")
</pallas_src>

<mosaic_0001>
module attributes {stable_mosaic.version = 11 : i64} {
  func.func @atom_encoder_kernel(%arg0: memref<32x1xi32, #tpu.memory_space<vmem>>, %arg1: memref<32x1xi32, #tpu.memory_space<vmem>>, %arg2: memref<32x1xi32, #tpu.memory_space<vmem>>, %arg3: memref<32x1xi32, #tpu.memory_space<vmem>>, %arg4: memref<32x1xi32, #tpu.memory_space<vmem>>, %arg5: memref<32x6xi32, #tpu.memory_space<vmem>>, %arg6: memref<16x32xf32, #tpu.memory_space<vmem>>, %arg7: memref<20x32xf32, #tpu.memory_space<vmem>>, %arg8: memref<13x32xf32, #tpu.memory_space<vmem>>, %arg9: memref<2x32xf32, #tpu.memory_space<vmem>>, %arg10: memref<2x32xf32, #tpu.memory_space<vmem>>, %arg11: memref<30x32xf32, #tpu.memory_space<vmem>>, %arg12: memref<32x128xf32, #tpu.memory_space<vmem>>, %arg13: memref<1x128xf32, #tpu.memory_space<vmem>>, %arg14: memref<128x32xf32, #tpu.memory_space<vmem>>, %arg15: memref<1x32xf32, #tpu.memory_space<vmem>>, %arg16: memref<32x128xf32, #tpu.memory_space<vmem>>, %arg17: memref<1x128xf32, #tpu.memory_space<vmem>>, %arg18: memref<128x32xf32, #tpu.memory_space<vmem>>, %arg19: memref<1x32xf32, #tpu.memory_space<vmem>>, %arg20: memref<32x32xf32, #tpu.memory_space<vmem>>, %arg21: memref<1x32xf32, #tpu.memory_space<vmem>>, %arg22: memref<16x64xf32, #tpu.memory_space<vmem>>) attributes {dimension_semantics = [], scalar_prefetch = 0 : i64, scratch_operands = 0 : i64, tpu.core_type = #tpu.core_type<tc>} {
    %c0 = arith.constant 0 : index
    %c0_0 = arith.constant 0 : index
    %0 = vector.load %arg0[%c0, %c0_0] : memref<32x1xi32, #tpu.memory_space<vmem>>, vector<32x1xi32>
    %c0_1 = arith.constant 0 : index
    %c0_2 = arith.constant 0 : index
    %1 = vector.load %arg7[%c0_1, %c0_2] : memref<20x32xf32, #tpu.memory_space<vmem>>, vector<20x32xf32>
    %2 = tpu.iota {dimensions = array<i32: 1>} : vector<32x20xi32>
    %3 = vector.broadcast %0 : vector<32x1xi32> to vector<32x20xi32>
    %4 = arith.cmpi eq, %3, %2 : vector<32x20xi32>
    %5 = arith.extui %4 : vector<32x20xi1> to vector<32x20xi32>
    %6 = arith.sitofp %5 : vector<32x20xi32> to vector<32x20xf32>
    %cst = arith.constant dense<0.000000e+00> : vector<32x32xf32>
    %7 = tpu.matmul %6, %1, %cst {dimension_numbers = #tpu.dot_dimension_numbers<[1], [0], [0], [1], [0, 0, 1, 1], [], []>} : vector<32x20xf32>, vector<20x32xf32>, vector<32x32xf32> -> vector<32x32xf32>
    %c0_3 = arith.constant 0 : index
    %c0_4 = arith.constant 0 : index
    %8 = vector.load %arg6[%c0_3, %c0_4] : memref<16x32xf32, #tpu.memory_space<vmem>>, vector<16x32xf32>
    %9 = tpu.concatenate %8, %8 in 0 : vector<16x32xf32>, vector<16x32xf32> -> vector<32x32xf32>
    %10 = arith.addf %7, %9 : vector<32x32xf32>
    %c0_5 = arith.constant 0 : index
    %c0_6 = arith.constant 0 : index
    %11 = vector.load %arg1[%c0_5, %c0_6] : memref<32x1xi32, #tpu.memory_space<vmem>>, vector<32x1xi32>
    %c0_7 = arith.constant 0 : index
    %c0_8 = arith.constant 0 : index
    %12 = vector.load %arg9[%c0_7, %c0_8] : memref<2x32xf32, #tpu.memory_space<vmem>>, vector<2x32xf32>
    %c1_i32 = arith.constant 1 : i32
    %13 = vector.broadcast %c1_i32 : i32 to vector<32x1xi32>
    %14 = arith.cmpi eq, %11, %13 : vector<32x1xi32>
    %15 = vector.extract_strided_slice %12 {offsets = [1, 0], sizes = [1, 32], strides = [1, 1]} : vector<2x32xf32> to vector<1x32xf32>
    %16 = vector.extract_strided_slice %12 {offsets = [0, 0], sizes = [1, 32], strides = [1, 1]} : vector<2x32xf32> to vector<1x32xf32>
    %17 = vector.shape_cast %14 : vector<32x1xi1> to vector<32x1xi1>
    %18 = vector.broadcast %17 : vector<32x1xi1> to vector<32x32xi1>
    %19 = vector.shape_cast %15 : vector<1x32xf32> to vector<1x32xf32>
    %20 = vector.broadcast %19 : vector<1x32xf32> to vector<32x32xf32>
    %21 = vector.shape_cast %16 : vector<1x32xf32> to vector<1x32xf32>
    %22 = vector.broadcast %21 : vector<1x32xf32> to vector<32x32xf32>
    %23 = arith.select %18, %20, %22 : vector<32x32xi1>, vector<32x32xf32>
    %24 = arith.addf %10, %23 : vector<32x32xf32>
    %c0_9 = arith.constant 0 : index
    %c0_10 = arith.constant 0 : index
    %25 = vector.load %arg2[%c0_9, %c0_10] : memref<32x1xi32, #tpu.memory_space<vmem>>, vector<32x1xi32>
    %c0_11 = arith.constant 0 : index
    %c0_12 = arith.constant 0 : index
    %26 = vector.load %arg8[%c0_11, %c0_12] : memref<13x32xf32, #tpu.memory_space<vmem>>, vector<13x32xf32>
    %27 = tpu.iota {dimensions = array<i32: 1>} : vector<32x13xi32>
    %28 = vector.broadcast %25 : vector<32x1xi32> to vector<32x13xi32>
    %29 = arith.cmpi eq, %28, %27 : vector<32x13xi32>
    %30 = arith.extui %29 : vector<32x13xi1> to vector<32x13xi32>
    %31 = arith.sitofp %30 : vector<32x13xi32> to vector<32x13xf32>
    %cst_13 = arith.constant dense<0.000000e+00> : vector<32x32xf32>
    %32 = tpu.matmul %31, %26, %cst_13 {dimension_numbers = #tpu.dot_dimension_numbers<[1], [0], [0], [1], [0, 0, 1, 1], [], []>} : vector<32x13xf32>, vector<13x32xf32>, vector<32x32xf32> -> vector<32x32xf32>
    %33 = arith.addf %24, %32 : vector<32x32xf32>
    %c0_14 = arith.constant 0 : index
    %c0_15 = arith.constant 0 : index
    %34 = vector.load %arg3[%c0_14, %c0_15] : memref<32x1xi32, #tpu.memory_space<vmem>>, vector<32x1xi32>
    %c0_16 = arith.constant 0 : index
    %c0_17 = arith.constant 0 : index
    %35 = vector.load %arg11[%c0_16, %c0_17] : memref<30x32xf32, #tpu.memory_space<vmem>>, vector<30x32xf32>
    %36 = tpu.iota {dimensions = array<i32: 1>} : vector<32x30xi32>
    %37 = vector.broadcast %34 : vector<32x1xi32> to vector<32x30xi32>
    %38 = arith.cmpi eq, %37, %36 : vector<32x30xi32>
    %39 = arith.extui %38 : vector<32x30xi1> to vector<32x30xi32>
    %40 = arith.sitofp %39 : vector<32x30xi32> to vector<32x30xf32>
    %cst_18 = arith.constant dense<0.000000e+00> : vector<32x32xf32>
    %41 = tpu.matmul %40, %35, %cst_18 {dimension_numbers = #tpu.dot_dimension_numbers<[1], [0], [0], [1], [0, 0, 1, 1], [], []>} : vector<32x30xf32>, vector<30x32xf32>, vector<32x32xf32> -> vector<32x32xf32>
    %42 = arith.addf %33, %41 : vector<32x32xf32>
    %c0_19 = arith.constant 0 : index
    %c0_20 = arith.constant 0 : index
    %43 = vector.load %arg4[%c0_19, %c0_20] : memref<32x1xi32, #tpu.memory_space<vmem>>, vector<32x1xi32>
    %c0_21 = arith.constant 0 : index
    %c0_22 = arith.constant 0 : index
    %44 = vector.load %arg10[%c0_21, %c0_22] : memref<2x32xf32, #tpu.memory_space<vmem>>, vector<2x32xf32>
    %c1_i32_23 = arith.constant 1 : i32
    %45 = vector.broadcast %c1_i32_23 : i32 to vector<32x1xi32>
    %46 = arith.cmpi eq, %43, %45 : vector<32x1xi32>
    %47 = vector.extract_strided_slice %44 {offsets = [1, 0], sizes = [1, 32], strides = [1, 1]} : vector<2x32xf32> to vector<1x32xf32>
    %48 = vector.extract_strided_slice %44 {offsets = [0, 0], sizes = [1, 32], strides = [1, 1]} : vector<2x32xf32> to vector<1x32xf32>
    %49 = vector.shape_cast %46 : vector<32x1xi1> to vector<32x1xi1>
    %50 = vector.broadcast %49 : vector<32x1xi1> to vector<32x32xi1>
    %51 = vector.shape_cast %47 : vector<1x32xf32> to vector<1x32xf32>
    %52 = vector.broadcast %51 : vector<1x32xf32> to vector<32x32xf32>
    %53 = vector.shape_cast %48 : vector<1x32xf32> to vector<1x32xf32>
    %54 = vector.broadcast %53 : vector<1x32xf32> to vector<32x32xf32>
    %55 = arith.select %50, %52, %54 : vector<32x32xi1>, vector<32x32xf32>
    %56 = arith.addf %42, %55 : vector<32x32xf32>
    %c0_24 = arith.constant 0 : index
    %c0_25 = arith.constant 0 : index
    %57 = vector.load %arg12[%c0_24, %c0_25] : memref<32x128xf32, #tpu.memory_space<vmem>>, vector<32x128xf32>
    %cst_26 = arith.constant dense<0.000000e+00> : vector<32x128xf32>
    %58 = tpu.matmul %56, %57, %cst_26 {dimension_numbers = #tpu.dot_dimension_numbers<[1], [0], [0], [1], [0, 0, 1, 1], [], []>} : vector<32x32xf32>, vector<32x128xf32>, vector<32x128xf32> -> vector<32x128xf32>
    %c0_27 = arith.constant 0 : index
    %c0_28 = arith.constant 0 : index
    %59 = vector.load %arg13[%c0_27, %c0_28] : memref<1x128xf32, #tpu.memory_space<vmem>>, vector<1x128xf32>
    %60 = vector.broadcast %59 : vector<1x128xf32> to vector<32x128xf32>
    %61 = arith.addf %58, %60 : vector<32x128xf32>
    %cst_29 = arith.constant 0.000000e+00 : f32
    %62 = vector.broadcast %cst_29 : f32 to vector<32x128xf32>
    %63 = arith.maximumf %61, %62 : vector<32x128xf32>
    %c0_30 = arith.constant 0 : index
    %c0_31 = arith.constant 0 : index
    %64 = vector.load %arg14[%c0_30, %c0_31] : memref<128x32xf32, #tpu.memory_space<vmem>>, vector<128x32xf32>
    %cst_32 = arith.constant dense<0.000000e+00> : vector<32x32xf32>
    %65 = tpu.matmul %63, %64, %cst_32 {dimension_numbers = #tpu.dot_dimension_numbers<[1], [0], [0], [1], [0, 0, 1, 1], [], []>} : vector<32x128xf32>, vector<128x32xf32>, vector<32x32xf32> -> vector<32x32xf32>
    %66 = arith.addf %56, %65 : vector<32x32xf32>
    %c0_33 = arith.constant 0 : index
    %c0_34 = arith.constant 0 : index
    %67 = vector.load %arg15[%c0_33, %c0_34] : memref<1x32xf32, #tpu.memory_space<vmem>>, vector<1x32xf32>
    %68 = vector.broadcast %67 : vector<1x32xf32> to vector<32x32xf32>
    %69 = arith.addf %66, %68 : vector<32x32xf32>
    %c0_35 = arith.constant 0 : index
    %c0_36 = arith.constant 0 : index
    %70 = vector.load %arg16[%c0_35, %c0_36] : memref<32x128xf32, #tpu.memory_space<vmem>>, vector<32x128xf32>
    %cst_37 = arith.constant dense<0.000000e+00> : vector<32x128xf32>
    %71 = tpu.matmul %69, %70, %cst_37 {dimension_numbers = #tpu.dot_dimension_numbers<[1], [0], [0], [1], [0, 0, 1, 1], [], []>} : vector<32x32xf32>, vector<32x128xf32>, vector<32x128xf32> -> vector<32x128xf32>
    %c0_38 = arith.constant 0 : index
    %c0_39 = arith.constant 0 : index
    %72 = vector.load %arg17[%c0_38, %c0_39] : memref<1x128xf32, #tpu.memory_space<vmem>>, vector<1x128xf32>
    %73 = vector.broadcast %72 : vector<1x128xf32> to vector<32x128xf32>
    %74 = arith.addf %71, %73 : vector<32x128xf32>
    %cst_40 = arith.constant 0.000000e+00 : f32
    %75 = vector.broadcast %cst_40 : f32 to vector<32x128xf32>
    %76 = arith.maximumf %74, %75 : vector<32x128xf32>
    %c0_41 = arith.constant 0 : index
    %c0_42 = arith.constant 0 : index
    %77 = vector.load %arg18[%c0_41, %c0_42] : memref<128x32xf32, #tpu.memory_space<vmem>>, vector<128x32xf32>
    %cst_43 = arith.constant dense<0.000000e+00> : vector<32x32xf32>
    %78 = tpu.matmul %76, %77, %cst_43 {dimension_numbers = #tpu.dot_dimension_numbers<[1], [0], [0], [1], [0, 0, 1, 1], [], []>} : vector<32x128xf32>, vector<128x32xf32>, vector<32x32xf32> -> vector<32x32xf32>
    %79 = arith.addf %69, %78 : vector<32x32xf32>
    %c0_44 = arith.constant 0 : index
    %c0_45 = arith.constant 0 : index
    %80 = vector.load %arg19[%c0_44, %c0_45] : memref<1x32xf32, #tpu.memory_space<vmem>>, vector<1x32xf32>
    %81 = vector.broadcast %80 : vector<1x32xf32> to vector<32x32xf32>
    %82 = arith.addf %79, %81 : vector<32x32xf32>
    %c0_46 = arith.constant 0 : index
    %c0_47 = arith.constant 0 : index
    %83 = vector.load %arg20[%c0_46, %c0_47] : memref<32x32xf32, #tpu.memory_space<vmem>>, vector<32x32xf32>
    %cst_48 = arith.constant dense<0.000000e+00> : vector<32x32xf32>
    %84 = tpu.matmul %82, %83, %cst_48 {dimension_numbers = #tpu.dot_dimension_numbers<[1], [0], [0], [1], [0, 0, 1, 1], [], []>} : vector<32x32xf32>, vector<32x32xf32>, vector<32x32xf32> -> vector<32x32xf32>
    %c0_49 = arith.constant 0 : index
    %c0_50 = arith.constant 0 : index
    %85 = vector.load %arg21[%c0_49, %c0_50] : memref<1x32xf32, #tpu.memory_space<vmem>>, vector<1x32xf32>
    %86 = vector.broadcast %85 : vector<1x32xf32> to vector<32x32xf32>
    %87 = arith.addf %84, %86 : vector<32x32xf32>
    %c0_51 = arith.constant 0 : index
    %c0_52 = arith.constant 0 : index
    %88 = vector.load %arg5[%c0_51, %c0_52] : memref<32x6xi32, #tpu.memory_space<vmem>>, vector<32x6xi32>
    %89 = tpu.iota {dimensions = array<i32: 1>} : vector<16x16xi32>
    %90 = tpu.iota {dimensions = array<i32: 0>} : vector<16x16xi32>
    %91 = arith.cmpi ne, %90, %89 : vector<16x16xi32>
    %92 = vector.extract_strided_slice %88 {offsets = [0, 0], sizes = [16, 6], strides = [1, 1]} : vector<32x6xi32> to vector<16x6xi32>
    %cst_53 = arith.constant 0.000000e+00 : f32
    %93 = vector.broadcast %cst_53 : f32 to vector<16x16xf32>
    %94 = vector.extract_strided_slice %92 {offsets = [0, 0], sizes = [16, 1], strides = [1, 1]} : vector<16x6xi32> to vector<16x1xi32>
    %95 = vector.broadcast %94 : vector<16x1xi32> to vector<16x16xi32>
    %96 = arith.cmpi eq, %95, %89 : vector<16x16xi32>
    %97 = arith.andi %96, %91 : vector<16x16xi1>
    %98 = arith.extui %97 : vector<16x16xi1> to vector<16x16xi32>
    %99 = arith.sitofp %98 : vector<16x16xi32> to vector<16x16xf32>
    %100 = arith.addf %93, %99 : vector<16x16xf32>
    %101 = vector.extract_strided_slice %92 {offsets = [0, 1], sizes = [16, 1], strides = [1, 1]} : vector<16x6xi32> to vector<16x1xi32>
    %102 = vector.broadcast %101 : vector<16x1xi32> to vector<16x16xi32>
    %103 = arith.cmpi eq, %102, %89 : vector<16x16xi32>
    %104 = arith.andi %103, %91 : vector<16x16xi1>
    %105 = arith.extui %104 : vector<16x16xi1> to vector<16x16xi32>
    %106 = arith.sitofp %105 : vector<16x16xi32> to vector<16x16xf32>
    %107 = arith.addf %100, %106 : vector<16x16xf32>
    %108 = vector.extract_strided_slice %92 {offsets = [0, 2], sizes = [16, 1], strides = [1, 1]} : vector<16x6xi32> to vector<16x1xi32>
    %109 = vector.broadcast %108 : vector<16x1xi32> to vector<16x16xi32>
    %110 = arith.cmpi eq, %109, %89 : vector<16x16xi32>
    %111 = arith.andi %110, %91 : vector<16x16xi1>
    %112 = arith.extui %111 : vector<16x16xi1> to vector<16x16xi32>
    %113 = arith.sitofp %112 : vector<16x16xi32> to vector<16x16xf32>
    %114 = arith.addf %107, %113 : vector<16x16xf32>
    %115 = vector.extract_strided_slice %92 {offsets = [0, 3], sizes = [16, 1], strides = [1, 1]} : vector<16x6xi32> to vector<16x1xi32>
    %116 = vector.broadcast %115 : vector<16x1xi32> to vector<16x16xi32>
    %117 = arith.cmpi eq, %116, %89 : vector<16x16xi32>
    %118 = arith.andi %117, %91 : vector<16x16xi1>
    %119 = arith.extui %118 : vector<16x16xi1> to vector<16x16xi32>
    %120 = arith.sitofp %119 : vector<16x16xi32> to vector<16x16xf32>
    %121 = arith.addf %114, %120 : vector<16x16xf32>
    %122 = vector.extract_strided_slice %92 {offsets = [0, 4], sizes = [16, 1], strides = [1, 1]} : vector<16x6xi32> to vector<16x1xi32>
    %123 = vector.broadcast %122 : vector<16x1xi32> to vector<16x16xi32>
    %124 = arith.cmpi eq, %123, %89 : vector<16x16xi32>
    %125 = arith.andi %124, %91 : vector<16x16xi1>
    %126 = arith.extui %125 : vector<16x16xi1> to vector<16x16xi32>
    %127 = arith.sitofp %126 : vector<16x16xi32> to vector<16x16xf32>
    %128 = arith.addf %121, %127 : vector<16x16xf32>
    %129 = vector.extract_strided_slice %92 {offsets = [0, 5], sizes = [16, 1], strides = [1, 1]} : vector<16x6xi32> to vector<16x1xi32>
    %130 = vector.broadcast %129 : vector<16x1xi32> to vector<16x16xi32>
    %131 = arith.cmpi eq, %130, %89 : vector<16x16xi32>
    %132 = arith.andi %131, %91 : vector<16x16xi1>
    %133 = arith.extui %132 : vector<16x16xi1> to vector<16x16xi32>
    %134 = arith.sitofp %133 : vector<16x16xi32> to vector<16x16xf32>
    %135 = arith.addf %128, %134 : vector<16x16xf32>
    %136 = vector.extract_strided_slice %87 {offsets = [0, 0], sizes = [16, 32], strides = [1, 1]} : vector<32x32xf32> to vector<16x32xf32>
    %cst_54 = arith.constant dense<0.000000e+00> : vector<16x32xf32>
    %137 = tpu.matmul %135, %136, %cst_54 {dimension_numbers = #tpu.dot_dimension_numbers<[1], [0], [0], [1], [0, 0, 1, 1], [], []>} : vector<16x16xf32>, vector<16x32xf32>, vector<16x32xf32> -> vector<16x32xf32>
    %138 = vector.extract_strided_slice %56 {offsets = [0, 0], sizes = [16, 32], strides = [1, 1]} : vector<32x32xf32> to vector<16x32xf32>
    %139 = arith.addf %138, %137 : vector<16x32xf32>
    %140 = vector.extract_strided_slice %88 {offsets = [16, 0], sizes = [16, 6], strides = [1, 1]} : vector<32x6xi32> to vector<16x6xi32>
    %cst_55 = arith.constant 0.000000e+00 : f32
    %141 = vector.broadcast %cst_55 : f32 to vector<16x16xf32>
    %142 = vector.extract_strided_slice %140 {offsets = [0, 0], sizes = [16, 1], strides = [1, 1]} : vector<16x6xi32> to vector<16x1xi32>
    %143 = vector.broadcast %142 : vector<16x1xi32> to vector<16x16xi32>
    %144 = arith.cmpi eq, %143, %89 : vector<16x16xi32>
    %145 = arith.andi %144, %91 : vector<16x16xi1>
    %146 = arith.extui %145 : vector<16x16xi1> to vector<16x16xi32>
    %147 = arith.sitofp %146 : vector<16x16xi32> to vector<16x16xf32>
    %148 = arith.addf %141, %147 : vector<16x16xf32>
    %149 = vector.extract_strided_slice %140 {offsets = [0, 1], sizes = [16, 1], strides = [1, 1]} : vector<16x6xi32> to vector<16x1xi32>
    %150 = vector.broadcast %149 : vector<16x1xi32> to vector<16x16xi32>
    %151 = arith.cmpi eq, %150, %89 : vector<16x16xi32>
    %152 = arith.andi %151, %91 : vector<16x16xi1>
    %153 = arith.extui %152 : vector<16x16xi1> to vector<16x16xi32>
    %154 = arith.sitofp %153 : vector<16x16xi32> to vector<16x16xf32>
    %155 = arith.addf %148, %154 : vector<16x16xf32>
    %156 = vector.extract_strided_slice %140 {offsets = [0, 2], sizes = [16, 1], strides = [1, 1]} : vector<16x6xi32> to vector<16x1xi32>
    %157 = vector.broadcast %156 : vector<16x1xi32> to vector<16x16xi32>
    %158 = arith.cmpi eq, %157, %89 : vector<16x16xi32>
    %159 = arith.andi %158, %91 : vector<16x16xi1>
    %160 = arith.extui %159 : vector<16x16xi1> to vector<16x16xi32>
    %161 = arith.sitofp %160 : vector<16x16xi32> to vector<16x16xf32>
    %162 = arith.addf %155, %161 : vector<16x16xf32>
    %163 = vector.extract_strided_slice %140 {offsets = [0, 3], sizes = [16, 1], strides = [1, 1]} : vector<16x6xi32> to vector<16x1xi32>
    %164 = vector.broadcast %163 : vector<16x1xi32> to vector<16x16xi32>
    %165 = arith.cmpi eq, %164, %89 : vector<16x16xi32>
    %166 = arith.andi %165, %91 : vector<16x16xi1>
    %167 = arith.extui %166 : vector<16x16xi1> to vector<16x16xi32>
    %168 = arith.sitofp %167 : vector<16x16xi32> to vector<16x16xf32>
    %169 = arith.addf %162, %168 : vector<16x16xf32>
    %170 = vector.extract_strided_slice %140 {offsets = [0, 4], sizes = [16, 1], strides = [1, 1]} : vector<16x6xi32> to vector<16x1xi32>
    %171 = vector.broadcast %170 : vector<16x1xi32> to vector<16x16xi32>
    %172 = arith.cmpi eq, %171, %89 : vector<16x16xi32>
    %173 = arith.andi %172, %91 : vector<16x16xi1>
    %174 = arith.extui %173 : vector<16x16xi1> to vector<16x16xi32>
    %175 = arith.sitofp %174 : vector<16x16xi32> to vector<16x16xf32>
    %176 = arith.addf %169, %175 : vector<16x16xf32>
    %177 = vector.extract_strided_slice %140 {offsets = [0, 5], sizes = [16, 1], strides = [1, 1]} : vector<16x6xi32> to vector<16x1xi32>
    %178 = vector.broadcast %177 : vector<16x1xi32> to vector<16x16xi32>
    %179 = arith.cmpi eq, %178, %89 : vector<16x16xi32>
    %180 = arith.andi %179, %91 : vector<16x16xi1>
    %181 = arith.extui %180 : vector<16x16xi1> to vector<16x16xi32>
    %182 = arith.sitofp %181 : vector<16x16xi32> to vector<16x16xf32>
    %183 = arith.addf %176, %182 : vector<16x16xf32>
    %184 = vector.extract_strided_slice %87 {offsets = [16, 0], sizes = [16, 32], strides = [1, 1]} : vector<32x32xf32> to vector<16x32xf32>
    %cst_56 = arith.constant dense<0.000000e+00> : vector<16x32xf32>
    %185 = tpu.matmul %183, %184, %cst_56 {dimension_numbers = #tpu.dot_dimension_numbers<[1], [0], [0], [1], [0, 0, 1, 1], [], []>} : vector<16x16xf32>, vector<16x32xf32>, vector<16x32xf32> -> vector<16x32xf32>
    %186 = vector.extract_strided_slice %56 {offsets = [16, 0], sizes = [16, 32], strides = [1, 1]} : vector<32x32xf32> to vector<16x32xf32>
    %187 = arith.addf %186, %185 : vector<16x32xf32>
    %188 = tpu.concatenate %139, %187 in 1 : vector<16x32xf32>, vector<16x32xf32> -> vector<16x64xf32>
    %c0_57 = arith.constant 0 : index
    %c0_58 = arith.constant 0 : index
    %189 = vector.load %arg22[%c0_57, %c0_58] : memref<16x64xf32, #tpu.memory_space<vmem>>, vector<16x64xf32>
    tpu.vector_store %arg22[%c0_57, %c0_58], %188 {strides = array<i32>} : memref<16x64xf32, #tpu.memory_space<vmem>>, vector<16x64xf32>,
    return
  }
}

</mosaic_0001>

<bundles_post_ra>
// kernel: atom_encoder_forward.1
= control target key start
LH: loop header
LB: loop body
LE: loop exit
PB: predicated region body
PF: predicated region fallthrough
CT: control target
= control target key end

     0   :  { %v2019_v0 = vmov 0   ;;  %vm296_vm0 = vcmask 1044480   ;;  %vm2020_vm1 = vmmov 1   ;;  %vm119_vm3 = vcmask 1043456   ;;  %s2700_s0 = inlined_call_operand.vmem [shape: s32[32,1], index: 0, kind: input, shape index: {}]   ;;  %s2701_s2 = inlined_call_operand.vmem [shape: s32[32,1], index: 2, kind: input, shape index: {}]   ;;  %s2702_s3 = inlined_call_operand.vmem [shape: s32[32,1], index: 3, kind: input, shape index: {}]   ;;  %s2703_s7 = inlined_call_operand.vmem [shape: f32[20,32], index: 7, kind: input, shape index: {}]   ;;  %s2704_s8 = inlined_call_operand.vmem [shape: f32[13,32], index: 8, kind: input, shape index: {}]   ;;  %s2705_s11 = inlined_call_operand.vmem [shape: f32[30,32], index: 11, kind: input, shape index: {}]   ;;  %s2706_s1 = inlined_call_operand.vmem [shape: s32[32,1], index: 1, kind: input, shape index: {}]   ;;  %s2707_s4 = inlined_call_operand.vmem [shape: s32[32,1], index: 4, kind: input, shape index: {}]   ;;  %s2708_s5 = inlined_call_operand.vmem [shape: s32[32,6], index: 5, kind: input, shape index: {}]   ;;  %s2709_s12 = inlined_call_operand.vmem [shape: f32[32,128], index: 12, kind: input, shape index: {}]   ;;  %s2710_s14 = inlined_call_operand.vmem [shape: f32[128,32], index: 14, kind: input, shape index: {}]   ;;  %s2711_s9 = inlined_call_operand.vmem [shape: f32[2,32], index: 9, kind: input, shape index: {}]   ;;  %s2712_s6 = inlined_call_operand.vmem [shape: f32[16,32], index: 6, kind: input, shape index: {}]   ;;  %s2713_s10 = inlined_call_operand.vmem [shape: f32[2,32], index: 10, kind: input, shape index: {}]   ;;  %s2714_s16 = inlined_call_operand.vmem [shape: f32[32,128], index: 16, kind: input, shape index: {}]   ;;  %s2715_s13 = inlined_call_operand.vmem [shape: f32[1,128], index: 13, kind: input, shape index: {}]   ;;  %s2716_s18 = inlined_call_operand.vmem [shape: f32[128,32], index: 18, kind: input, shape index: {}]   ;;  %s2717_s15 = inlined_call_operand.vmem [shape: f32[1,32], index: 15, kind: input, shape index: {}]   ;;  %s2718_s20 = inlined_call_operand.vmem [shape: f32[32,32], index: 20, kind: input, shape index: {}]   ;;  %s2719_s17 = inlined_call_operand.vmem [shape: f32[1,128], index: 17, kind: input, shape index: {}]   ;;  %s2720_s19 = inlined_call_operand.vmem [shape: f32[1,32], index: 19, kind: input, shape index: {}]   ;;  %s2721_s21 = inlined_call_operand.vmem [shape: f32[1,32], index: 21, kind: input, shape index: {}]   ;;  %s2722_s22 = inlined_call_operand.vmem [shape: f32[16,64], index: 22, kind: output, shape index: {}]  }
   0x1   :  { %2730 = sst [smem:[#allocation2_spill]] %s2700_s0  ;;  %2001 = vset.pattern.permute.xlu1 %v2019_v0  ;;  %2000 = vset.pattern.permute.xlu0 %v2019_v0  ;;  %vm1860_vm2 = vmpackc.low %vm296_vm0, %vm2020_vm1  ;;  %v528_v29 = vld [vmem:[%s2707_s4 + $0x8] sm:$0xff]  ;;  %v527_v30 = vld [vmem:[%s2707_s4] sm:$0xff]  ;;  %v2021_v40 = vmov 1   ;;  %v2022_v43 = vmov 2   ;;  %v2023_v45 = vmov 3   ;;  %v78_v48 = vlaneseq }
   0x2   :  { %2731 = sst [smem:[#allocation3_spill]] %s2701_s2  ;;  %s2737_s29 = sld [smem:[#allocation2_spill]]  ;;  %vm533_vm8 = vcmp.eq.s32.totalorder %v528_v29, 1  ;;  %vm532_vm9 = vcmp.eq.s32.totalorder %v527_v30, 1  ;;  %v530_v33 = vld [vmem:[%s2707_s4 + $0x18] sm:$0xff]  ;;  %v529_v34 = vld [vmem:[%s2707_s4 + $0x10] sm:$0xff] }
   0x3   :  { %2732 = sst [smem:[#allocation4_spill]] %s2702_s3  ;;  %s2738_s25 = sld [smem:[#allocation3_spill]]  ;;  %v537_v35 = vsel %vm533_vm8, 1, %v2019_v0  ;;  %v536_v36 = vsel %vm532_vm9, 1, %v2019_v0  ;;  %vm535_vm10 = vcmp.eq.s32.totalorder %v530_v33, 1  ;;  %vm534_vm11 = vcmp.eq.s32.totalorder %v529_v34, 1 }
   0x4   :  { %2733 = sst [smem:[#allocation5_spill]] %s2703_s7  ;;  %s2739_s28 = sld [smem:[#allocation4_spill]]  ;;  %v539_v37 = vsel %vm535_vm10, 1, %v2019_v0  ;;  %v538_v38 = vsel %vm534_vm11, 1, %v2019_v0  ;;  %v1137_v39 = vld [vmem:[%s2708_s5] sm:$0xff]  ;;  %v1138_v41 = vld [vmem:[%s2708_s5 + $0x8] sm:$0xff] }
   0x5   :  { %2734 = sst [smem:[#allocation6_spill]] %s2704_s8  ;;  %s2740_s0 = sld [smem:[#allocation5_spill]]  ;;  %v1139_v42 = vld [vmem:[%s2708_s5 + $0x10] sm:$0xff]  ;;  %v1140_v44 = vld [vmem:[%s2708_s5 + $0x18] sm:$0xff]  ;;  %v2024_v46 = vmov 4   ;;  %v2025_v47 = vmov 5  }
   0x6   :  { %2735 = sst [smem:[#allocation7_spill]] %s2705_s11  ;;  %s2741_s26 = sld [smem:[#allocation6_spill]]  ;;  %v2253_v49 = vand.u32 127, %v78_v48  ;;  %vm106_vm12 = vcmask 162816   ;;  %v2026_v52 = vmov 0.0   ;;  %vm434_vm14 = vcmask 1045504  }
   0x7   :  { %2736 = sst [smem:[#allocation8_spill]] %s2706_s1  ;;  %s2742_s23 = sld [smem:[#allocation7_spill]]  ;;  %v1561_v33 = vld [vmem:[%s2721_s21] ss:$0 sm:$0xff] }
   0x8   :  { %v73_v1 = vld [vmem:[%s2737_s29 + $0x10] sm:$0xff]  ;;  %v71_v2 = vld [vmem:[%s2737_s29] sm:$0xff]  ;;  %v74_v3 = vld [vmem:[%s2737_s29 + $0x18] sm:$0xff]  ;;  %s2743_s7 = sld [smem:[#allocation8_spill]]  ;;  %s2027_s21 = smov 32  }
   0x9   :  { %87 = vperm.xlu1 %2001, %v73_v1   ;;  %81 = vperm.xlu0 %2000, %v71_v2   ;;  %v72_v4 = vld [vmem:[%s2737_s29 + $0x8] sm:$0xff]  ;;  %v253_v6 = vld [vmem:[%s2738_s25] sm:$0xff]  ;;  %v256_v18 = vld [vmem:[%s2738_s25 + $0x18] sm:$0xff] }
   0xa   :  { %v254_v5 = vld [vmem:[%s2738_s25 + $0x8] sm:$0xff]  ;;  %v389_v10 = vld [vmem:[%s2739_s28] sm:$0xff]  ;;  %v255_v19 = vld [vmem:[%s2738_s25 + $0x10] sm:$0xff] }
   0xb   :  { %v390_v7 = vld [vmem:[%s2739_s28 + $0x8] sm:$0xff]  ;;  %v75_v8 = vld [vmem:[%s2740_s0] sm:$0xff]  ;;  %v77_v15 = vld [vmem:[%s2740_s0 + $0x10] sm:$0xf] }
   0xc   :  { %v76_v9 = vld [vmem:[%s2740_s0 + $0x8] sm:$0xff]  ;;  %v257_v12 = vld [vmem:[%s2741_s26] sm:$0xff]  ;;  %v392_v23 = vld [vmem:[%s2739_s28 + $0x18] sm:$0xff] }
   0xd   :  { %90 = vperm.xlu1 %2001, %v74_v3   ;;  %84 = vperm.xlu0 %2000, %v72_v4   ;;  %v1855_v11 = vpack.c.bf16 %v76_v9, %v75_v8  ;;  %v258_v13 = vld [vmem:[%s2741_s26 + $0x8] sm:$0x1f]  ;;  %v393_v16 = vld [vmem:[%s2742_s23] sm:$0xff]  ;;  %v391_v24 = vld [vmem:[%s2739_s28 + $0x10] sm:$0xff] }
   0xe   :  { %v1859_v14 = vpack.c.bf16 %v258_v13, %v257_v12  ;;  %v394_v17 = vld [vmem:[%s2742_s23 + $0x8] sm:$0xff]  ;;  %v208_v22 = vld [vmem:[%s2743_s7] sm:$0xff]  ;;  %v211_v25 = vld [vmem:[%s2743_s7 + $0x18] sm:$0xff] }
   0xf   :  { %1856 = vmatprep.subr.bf16.mxu0 %v1855_v11  ;;  %v2198_v20 = vpack.c.bf16 %v394_v17, %v393_v16  ;;  %v209_v21 = vld [vmem:[%s2743_s7 + $0x8] sm:$0xff]  ;;  %vm213_vm5 = vcmp.eq.s32.totalorder %v208_v22, 1  ;;  %v210_v26 = vld [vmem:[%s2743_s7 + $0x10] sm:$0xff]  ;;  %vm216_vm6 = vcmp.eq.s32.totalorder %v211_v25, 1  ;;  %v396_v55 = vld [vmem:[%s2742_s23 + $0x18] sm:$0x3f] }
  0x10   :  { %1858 = vmatpush3.bf16.msra.mxu0 %v1855_v11  ;;  %1861 = vmatprep.subr.msk.bf16.mxu1 %vm1860_vm2, %v1859_v14  ;;  %vm214_vm4 = vcmp.eq.s32.totalorder %v209_v21, 1  ;;  %v217_v28 = vsel %vm213_vm5, 1, %v2019_v0  ;;  %vm215_vm7 = vcmp.eq.s32.totalorder %v210_v26, 1  ;;  %v220_v31 = vsel %vm216_vm6, 1, %v2019_v0  ;;  %v395_v54 = vld [vmem:[%s2742_s23 + $0x10] sm:$0xff] }
  0x11   :  { %263 = vperm.xlu1 %2001, %v254_v5   ;;  %260 = vperm.xlu0 %2000, %v253_v6   ;;  %v218_v27 = vsel %vm214_vm4, 1, %v2019_v0  ;;  %v219_v32 = vsel %vm215_vm7, 1, %v2019_v0  ;;  %v1869_v58 = vpack.c.bf16 %v396_v55, %v395_v54  ;;  %vm283_vm4 = vcmask 105472  }
  0x12   :  { %1691 = vmatprep.subr.msk.mxu0 %vm119_vm3, %v77_v15  ;;  %1864 = vmatpush3.bf16.msk.msra.mxu1 %vm1860_vm2, %v1859_v14  ;;  %vm2268_vm2 = vmpackc.low %vm434_vm14, %vm2020_vm1  ;;  %vm421_vm6 = vcmask 244736  }
  0x14   :  { %1692 = vmatpush3.msk.msra.mxu0 %vm119_vm3, %v77_v15 }
  0x15   :  { %401 = vperm.xlu1 %2001, %v390_v7   ;;  %398 = vperm.xlu0 %2000, %v389_v10  }
  0x16   :  { %1866 = vmatprep.subr.bf16.mxu0 %v2198_v20 }
  0x19   :  { %269 = vperm.xlu1 %2001, %v256_v18   ;;  %266 = vperm.xlu0 %2000, %v255_v19  }
  0x1d   :  { %407 = vperm.xlu1 %2001, %v392_v23   ;;  %404 = vperm.xlu0 %2000, %v391_v24   ;;  %v2324_v23 = vshrl.u32 %v78_v48, 7 }
  0x1f   :  { %v1143_v24 = vadd.s32 8, %v2324_v23 }
  0x21   :  { %225 = vperm.xlu1 %2001, %v218_v27   ;;  %222 = vperm.xlu0 %2000, %v217_v28   ;;  %v243_v27 = vsub.s32 0, %v2324_v23 }
  0x25   :  { %231 = vperm.xlu1 %2001, %v220_v31   ;;  %228 = vperm.xlu0 %2000, %v219_v32  }
  0x29   :  { %544 = vperm.xlu1 %2001, %v537_v35   ;;  %541 = vperm.xlu0 %2000, %v536_v36  }
  0x2d   :  { %550 = vperm.xlu1 %2001, %v539_v37   ;;  %547 = vperm.xlu0 %2000, %v538_v38  }
  0x31   :  { %2002 = vset.pattern.permute.xlu1 %v2021_v40  ;;  %1147 = vperm.xlu0 %2000, %v1137_v39  }
  0x32   :  { %1163 = vperm.xlu1 %2002, %v1137_v39  }
  0x35   :  { %1150 = vperm.xlu0 %2000, %v1138_v41  }
  0x36   :  { %1166 = vperm.xlu1 %2002, %v1138_v41  }
  0x39   :  { %1327 = vperm.xlu0 %2000, %v1139_v42  }
  0x3a   :  { %2003 = vset.pattern.permute.xlu1 %v2022_v43 }
  0x3b   :  { %1182 = vperm.xlu1 %2003, %v1138_v41  }
  0x3d   :  { %1330 = vperm.xlu0 %2000, %v1140_v44  }
  0x3f   :  { %2004 = vset.pattern.permute.xlu1 %v2023_v45 }
  0x40   :  { %1195 = vperm.xlu1 %2004, %v1137_v39  }
  0x41   :  { %2008 = vset.pattern.permute.xlu0 %v2024_v46 }
  0x42   :  { %1211 = vperm.xlu0 %2008, %v1137_v39  }
  0x44   :  { %2005 = vset.pattern.permute.xlu1 %v2021_v40 }
  0x45   :  { %1343 = vperm.xlu1 %2005, %v1139_v42  }
  0x46   :  { %2009 = vset.pattern.permute.xlu0 %v2022_v43 }
  0x47   :  { %1179 = vperm.xlu0 %2009, %v1137_v39  }
  0x49   :  { %2006 = vset.pattern.permute.xlu1 %v2023_v45 }
  0x4a   :  { %1198 = vperm.xlu1 %2006, %v1138_v41  }
  0x4b   :  { %1362 = vperm.xlu0 %2009, %v1140_v44  }
  0x4e   :  { %2007 = vset.pattern.permute.xlu1 %v2021_v40 }
  0x4f   :  { %1346 = vperm.xlu1 %2007, %v1140_v44   ;;  %2014 = vset.pattern.permute.xlu0 %v2025_v47 }
  0x50   :  { %1230 = vperm.xlu0 %2014, %v1138_v41  }
  0x53   :  { %2010 = vset.pattern.permute.xlu1 %v2022_v43 }
  0x54   :  { %1359 = vperm.xlu1 %2010, %v1139_v42   ;;  %2016 = vset.pattern.permute.xlu0 %v2024_v46 }
  0x55   :  { %1394 = vperm.xlu0 %2016, %v1140_v44  }
  0x58   :  { %2011 = vset.pattern.permute.xlu1 %v2024_v46 }
  0x59   :  { %1214 = vperm.xlu1 %2011, %v1138_v41   ;;  %2018 = vset.pattern.permute.xlu0 %v2025_v47 }
  0x5d   :  { %2012 = vset.pattern.permute.xlu1 %v2025_v47 }
  0x5e   :  { %1227 = vperm.xlu1 %2012, %v1137_v39  }
  0x62   :  { %2013 = vset.pattern.permute.xlu1 %v2023_v45 }
  0x63   :  { %1375 = vperm.xlu1 %2013, %v1139_v42  }
  0x67   :  { %1378 = vperm.xlu1 %2013, %v1140_v44  }
  0x6b   :  { %2015 = vset.pattern.permute.xlu1 %v2024_v46 }
  0x6c   :  { %1391 = vperm.xlu1 %2015, %v1139_v42  }
  0x70   :  { %2017 = vset.pattern.permute.xlu1 %v2025_v47 }
  0x71   :  { %1407 = vperm.xlu1 %2017, %v1139_v42  }
  0x75   :  { %1410 = vperm.xlu1 %2017, %v1140_v44  }
  0x88   :  { %v88_v50 = vpop.permute.xlu1 %87  ;;  %v82_v51 = vpop.permute.xlu0 %81 }
  0x89   :  { %vm92_vm13 = vcmp.eq.s32.totalorder %v82_v51, %v2253_v49  ;;  %vm94_vm15 = vcmp.eq.s32.totalorder %v88_v50, %v2253_v49 }
  0x8a   :  { %v1522_v53 = vsel %vm92_vm13, 1.0, %v2026_v52  ;;  %v1524_v61 = vsel %vm94_vm15, 1.0, %v2026_v52  ;;  %vm2332_vm13 = vcmp.ne.s32.totalorder %v1143_v24, %v2253_v49 }
  0x8b   :  { %1693 = vmatprep.mubr.msk.f32.mxu0 %vm106_vm12, %v1522_v53 }
  0x8c   :  { %v91_v56 = vpop.permute.xlu1 %90  ;;  %v85_v57 = vpop.permute.xlu0 %84 }
  0x8d   :  { %vm93_vm0 = vcmp.eq.s32.totalorder %v85_v57, %v2253_v49  ;;  %vm95_vm3 = vcmp.eq.s32.totalorder %v91_v56, %v2253_v49 }
  0x8e   :  { %v1523_v59 = vsel %vm93_vm0, 1.0, %v2026_v52  ;;  %v1525_v0 = vsel %vm95_vm3, 1.0, %v2026_v52  ;;  %vm2346_vm3 = vcmp.ne.s32.totalorder %v2324_v23, %v2253_v49 }
  0x8f   :  { %1694 = vmatmul.mubr.msk.f32.vlgmr.msra.gmra.mrb[0].mxu0 %vm106_vm12, %v1523_v59 }
  0x90   :  { %v264_v62 = vpop.permute.xlu1 %263  ;;  %1696 = vmatprep.mubr.msk.f32.mxu0 %vm106_vm12, %v1524_v61  ;;  %v261_v63 = vpop.permute.xlu0 %260  ;;  %1868 = vmatpush3.bf16.msra.mxu0 %v2198_v20 }
  0x91   :  { %vm272_vm5 = vcmp.eq.s32.totalorder %v264_v62, %v2253_v49  ;;  %vm271_vm1 = vcmp.eq.s32.totalorder %v261_v63, %v2253_v49  ;;  %1871 = vmatprep.subr.msk.bf16.mxu0 %vm2268_vm2, %v1869_v58 }
  0x92   :  { %v1532_v1 = vsel %vm272_vm5, 1.0, %v2026_v52  ;;  %v1531_v2 = vsel %vm271_vm1, 1.0, %v2026_v52 }
  0x93   :  { %1697 = vmatmul.mubr.msk.f32.gmra.mrb[2].mxu0 %vm106_vm12, %v1525_v0  ;;  %1703 = vmatprep.mubr.msk.f32.mxu1 %vm283_vm4, %v1531_v2 }
  0x94   :  { %v402_v3 = vpop.permute.xlu1 %401  ;;  %1704 = vmatmul.mubr.msk.f32.vlgmr.msra.gmra.mrb[0].mxu1 %vm283_vm4, %v1532_v1  ;;  %v399_v4 = vpop.permute.xlu0 %398  ;;  %1874 = vmatpush3.bf16.msk.msra.mxu0 %vm2268_vm2, %v1869_v58 }
  0x95   :  { %vm410_vm7 = vcmp.eq.s32.totalorder %v402_v3, %v2253_v49  ;;  %vm409_vm8 = vcmp.eq.s32.totalorder %v399_v4, %v2253_v49 }
  0x96   :  { %v1541_v5 = vsel %vm410_vm7, 1.0, %v2026_v52  ;;  %v1540_v6 = vsel %vm409_vm8, 1.0, %v2026_v52 }
  0x97   :  { %1717 = vmatprep.mubr.msk.f32.mxu0 %vm421_vm6, %v1540_v6 }
  0x98   :  { %v270_v7 = vpop.permute.xlu1 %269  ;;  %1718 = vmatmul.mubr.msk.f32.vlgmr.msra.gmra.mrb[4].mxu0 %vm421_vm6, %v1541_v5  ;;  %v267_v8 = vpop.permute.xlu0 %266 }
  0x99   :  { %vm274_vm9 = vcmp.eq.s32.totalorder %v270_v7, %v2253_v49  ;;  %vm273_vm10 = vcmp.eq.s32.totalorder %v267_v8, %v2253_v49 }
  0x9a   :  { %v1534_v9 = vsel %vm274_vm9, 1.0, %v2026_v52  ;;  %v1533_v10 = vsel %vm273_vm10, 1.0, %v2026_v52 }
  0x9b   :  { %1706 = vmatprep.mubr.msk.f32.mxu1 %vm283_vm4, %v1533_v10  ;;  %v572_v10 = vld [vmem:[%s2709_s12] sm:$0xff] }
  0x9c   :  { %v408_v11 = vpop.permute.xlu1 %407  ;;  %1707 = vmatmul.mubr.msk.f32.gmra.mrb[2].mxu1 %vm283_vm4, %v1534_v9  ;;  %v405_v12 = vpop.permute.xlu0 %404 }
  0x9d   :  { %vm412_vm11 = vcmp.eq.s32.totalorder %v408_v11, %v2253_v49  ;;  %vm411_vm12 = vcmp.eq.s32.totalorder %v405_v12, %v2253_v49  ;;  %v573_v11 = vld [vmem:[%s2709_s12 + $0x8] sm:$0xff] }
  0x9e   :  { %v1543_v13 = vsel %vm412_vm11, 1.0, %v2026_v52  ;;  %v1542_v14 = vsel %vm411_vm12, 1.0, %v2026_v52  ;;  %v1875_v12 = vpack.c.bf16 %v573_v11, %v572_v10 }
  0x9f   :  { %1720 = vmatprep.mubr.msk.f32.mxu0 %vm421_vm6, %v1542_v14 }
  0xa0   :  { %v2306_v15 = vpop.permute.xlu1 %225  ;;  %1721 = vmatmul.mubr.msk.f32.gmra.mrb[6].mxu0 %vm421_vm6, %v1543_v13  ;;  %v2309_v16 = vpop.permute.xlu0 %222  ;;  %1876 = vmatprep.subr.bf16.mxu1 %v1875_v12 }
  0xa1   :  { %1878 = vmatpush3.bf16.msra.mxu1 %v1875_v12 }
  0xa4   :  { %v2311_v17 = vpop.permute.xlu1 %231  ;;  %v2313_v18 = vpop.permute.xlu0 %228 }
  0xa8   :  { %v2315_v19 = vpop.permute.xlu1 %544  ;;  %v2317_v20 = vpop.permute.xlu0 %541 }
  0xac   :  { %v2319_v21 = vpop.permute.xlu1 %550  ;;  %v2321_v22 = vpop.permute.xlu0 %547 }
  0xb0   :  { %v2327_v25 = vpop.permute.xlu0 %1147 }
  0xb1   :  { %v2329_v26 = vpop.permute.xlu1 %1163 }
  0xb4   :  { %v1151_v28 = vpop.permute.xlu0 %1150 }
  0xb5   :  { %vm1153_vm14 = vcmp.eq.s32.totalorder %v1151_v28, %v2253_v49  ;;  %v1167_v29 = vpop.permute.xlu1 %1166 }
  0xb6   :  { %vm1155_vm15 = vmand %vm1153_vm14, %vm2332_vm13  ;;  %vm1169_vm0 = vcmp.eq.s32.totalorder %v1167_v29, %v2253_v49  ;;  %v574_v29 = vld [vmem:[%s2709_s12 + $0x10] sm:$0xff] }
  0xb7   :  { %v1567_v30 = vsel %vm1155_vm15, 1.0, %v2026_v52  ;;  %vm1171_vm2 = vmand %vm1169_vm0, %vm2332_vm13 }
  0xb8   :  { %v1569_v31 = vsel %vm1171_vm2, 1.0, %v2026_v52  ;;  %v1328_v32 = vpop.permute.xlu0 %1327 }
  0xb9   :  { %v1177_v34 = vadd.f32 %v1569_v31, %v1567_v30  ;;  %vm1332_vm4 = vcmp.eq.s32.totalorder %v1328_v32, %v2253_v49  ;;  %v575_v30 = vld [vmem:[%s2709_s12 + $0x18] sm:$0xff] }
  0xba   :  { %vm1334_vm5 = vmand %vm1332_vm4, %vm2346_vm3  ;;  %v1183_v35 = vpop.permute.xlu1 %1182  ;;  %v1879_v32 = vpack.c.bf16 %v575_v30, %v574_v29  ;;  %v687_v29 = vld [vmem:[%s2710_s14 + $0x10] sm:$0xff]  ;;  %v688_v30 = vld [vmem:[%s2710_s14 + $0x18] sm:$0xff] }
  0xbb   :  { %vm1185_vm1 = vcmp.eq.s32.totalorder %v1183_v35, %v2253_v49  ;;  %v1580_v44 = vsel %vm1334_vm5, 1.0, %v2026_v52 }
  0xbc   :  { %vm1187_vm6 = vmand %vm1185_vm1, %vm2332_vm13  ;;  %v1331_v36 = vpop.permute.xlu0 %1330  ;;  %1880 = vmatprep.subr.bf16.mxu1 %v1879_v32 }
  0xbd   :  { %v1571_v37 = vsel %vm1187_vm6, 1.0, %v2026_v52  ;;  %vm1333_vm7 = vcmp.eq.s32.totalorder %v1331_v36, %v2253_v49  ;;  %1882 = vmatpush3.bf16.msra.mxu1 %v1879_v32 }
  0xbe   :  { %v1193_v38 = vadd.f32 %v1571_v37, %v1177_v34  ;;  %vm2360_vm8 = vmand %vm1333_vm7, %vm2332_vm13 }
  0xbf   :  { %v2364_v40 = vpop.permute.xlu1 %1195  ;;  %v1581_v54 = vsel %vm2360_vm8, 1.0, %v2026_v52 }
  0xc1   :  { %v2366_v41 = vpop.permute.xlu0 %1211 }
  0xc4   :  { %v1344_v42 = vpop.permute.xlu1 %1343 }
  0xc5   :  { %vm1348_vm9 = vcmp.eq.s32.totalorder %v1344_v42, %v2253_v49 }
  0xc6   :  { %vm1350_vm10 = vmand %vm1348_vm9, %vm2346_vm3  ;;  %v2371_v43 = vpop.permute.xlu0 %1179 }
  0xc7   :  { %v1582_v45 = vsel %vm1350_vm10, 1.0, %v2026_v52 }
  0xc8   :  { %v1356_v46 = vadd.f32 %v1582_v45, %v1580_v44  ;;  %v685_v45 = vld [vmem:[%s2710_s14] sm:$0xff] }
  0xc9   :  { %v1199_v47 = vpop.permute.xlu1 %1198 }
  0xca   :  { %vm1201_vm11 = vcmp.eq.s32.totalorder %v1199_v47, %v2253_v49  ;;  %v1363_v48 = vpop.permute.xlu0 %1362 }
  0xcb   :  { %vm1203_vm12 = vmand %vm1201_vm11, %vm2332_vm13  ;;  %vm1365_vm14 = vcmp.eq.s32.totalorder %v1363_v48, %v2253_v49  ;;  %v239_v48 = vsub.s32 1, %v2324_v23 }
  0xcc   :  { %v1573_v50 = vsel %vm1203_vm12, 1.0, %v2026_v52  ;;  %vm1367_vm15 = vmand %vm1365_vm14, %vm2332_vm13 }
  0xcd   :  { %v1209_v51 = vadd.f32 %v1573_v50, %v1193_v38  ;;  %v1585_v56 = vsel %vm1367_vm15, 1.0, %v2026_v52  ;;  %v212_v50 = vld [vmem:[%s2711_s9] sm:$0x3] }
  0xce   :  { %v1347_v53 = vpop.permute.xlu1 %1346 }
  0xcf   :  { %vm1349_vm0 = vcmp.eq.s32.totalorder %v1347_v53, %v2253_v49  ;;  %v1231_v58 = vpop.permute.xlu0 %1230  ;;  %v244_v53 = vrot.slane %v212_v50, %v243_v27 }
  0xd0   :  { %vm1351_vm2 = vmand %vm1349_vm0, %vm2332_vm13  ;;  %vm1233_vm1 = vcmp.eq.s32.totalorder %v1231_v58, %v2253_v49 }
  0xd1   :  { %v1583_v55 = vsel %vm1351_vm2, 1.0, %v2026_v52  ;;  %vm1235_vm6 = vmand %vm1233_vm1, %vm2332_vm13 }
  0xd2   :  { %v1357_v57 = vadd.f32 %v1583_v55, %v1581_v54  ;;  %v1577_v1 = vsel %vm1235_vm6, 1.0, %v2026_v52  ;;  %v105_v54 = vld [vmem:[%s2712_s6 + $0x8] sm:$0xff]  ;;  %v104_v55 = vld [vmem:[%s2712_s6] sm:$0xff] }
  0xd3   :  { %v1360_v59 = vpop.permute.xlu1 %1359 }
  0xd4   :  { %v1373_v60 = vadd.f32 %v1585_v56, %v1357_v57  ;;  %vm1364_vm4 = vcmp.eq.s32.totalorder %v1360_v59, %v2253_v49  ;;  %v1395_v5 = vpop.permute.xlu0 %1394 }
  0xd5   :  { %vm1366_vm5 = vmand %vm1364_vm4, %vm2346_vm3  ;;  %vm1397_vm10 = vcmp.eq.s32.totalorder %v1395_v5, %v2253_v49 }
  0xd6   :  { %v1584_v61 = vsel %vm1366_vm5, 1.0, %v2026_v52  ;;  %vm1399_vm12 = vmand %vm1397_vm10, %vm2332_vm13  ;;  %vm553_vm10 = vcmp.eq.s32.totalorder %v2315_v19, 1 }
  0xd7   :  { %v1372_v62 = vadd.f32 %v1584_v61, %v1356_v46  ;;  %v1589_v14 = vsel %vm1399_vm12, 1.0, %v2026_v52  ;;  %v686_v46 = vld [vmem:[%s2710_s14 + $0x8] sm:$0xff]  ;;  %v531_v61 = vld [vmem:[%s2713_s10] sm:$0x3]  ;;  %vm583_vm12 = vcmask 261120  }
  0xd8   :  { %v1215_v63 = vpop.permute.xlu1 %1214  ;;  %v2452_v47 = vpack.c.bf16 %v686_v46, %v685_v45  ;;  %v559_v5 = vrot.slane %v531_v61, %v239_v48  ;;  %v563_v10 = vrot.slane %v531_v61, %v243_v27  ;;  %v697_v61 = vld [vmem:[%s2710_s14 + $0x60] sm:$0xff] }
  0xd9   :  { %vm1217_vm7 = vcmp.eq.s32.totalorder %v1215_v63, %v2253_v49 }
  0xda   :  { %vm1219_vm8 = vmand %vm1217_vm7, %vm2332_vm13  ;;  %1884 = vmatprep.subr.bf16.mxu1 %v2452_v47  ;;  %vm233_vm7 = vcmp.eq.s32.totalorder %v2309_v16, 1 }
  0xdb   :  { %v1575_v0 = vsel %vm1219_vm8, 1.0, %v2026_v52  ;;  %vm236_vm8 = vcmp.eq.s32.totalorder %v2311_v17, 1 }
  0xdc   :  { %v1225_v2 = vadd.f32 %v1575_v0, %v1209_v51  ;;  %v240_v51 = vrot.slane %v212_v50, %v239_v48 }
  0xdd   :  { %v2402_v3 = vpop.permute.xlu1 %1227 }
  0xde   :  { %v2404_v4 = vadd.f32 %v1577_v1, %v1225_v2  ;;  %v248_v2 = vsel %vm236_vm8, %v240_v51, %v244_v53  ;;  %vm1216_vm8 = vcmp.eq.s32.totalorder %v2366_v41, %v2253_v49 }
  0xe2   :  { %v1376_v6 = vpop.permute.xlu1 %1375 }
  0xe3   :  { %vm1380_vm9 = vcmp.eq.s32.totalorder %v1376_v6, %v2253_v49 }
  0xe4   :  { %vm1382_vm11 = vmand %vm1380_vm9, %vm2346_vm3  ;;  %vm235_vm9 = vcmp.eq.s32.totalorder %v2313_v18, 1 }
  0xe5   :  { %v1586_v7 = vsel %vm1382_vm11, 1.0, %v2026_v52  ;;  %vm552_vm11 = vcmp.eq.s32.totalorder %v2317_v20, 1 }
  0xe6   :  { %v1388_v8 = vadd.f32 %v1586_v7, %v1372_v62  ;;  %v1379_v9 = vpop.permute.xlu1 %1378 }
  0xe7   :  { %vm1381_vm14 = vcmp.eq.s32.totalorder %v1379_v9, %v2253_v49  ;;  %v247_v9 = vsel %vm235_vm9, %v240_v51, %v244_v53  ;;  %vm1232_vm9 = vcmp.eq.s32.totalorder %v2402_v3, %v2253_v49 }
  0xe8   :  { %vm1383_vm15 = vmand %vm1381_vm14, %vm2332_vm13  ;;  %vm555_vm14 = vcmp.eq.s32.totalorder %v2319_v21, 1  ;;  %v692_v21 = vld [vmem:[%s2710_s14 + $0x38] sm:$0xff] }
  0xe9   :  { %v1587_v13 = vsel %vm1383_vm15, 1.0, %v2026_v52  ;;  %vm554_vm15 = vcmp.eq.s32.totalorder %v2321_v22, 1  ;;  %v567_v50 = vsel %vm555_vm14, %v559_v5, %v563_v10  ;;  %vm1242_vm14 = vcmask 130048  }
  0xea   :  { %v1389_v24 = vadd.f32 %v1587_v13, %v1373_v60  ;;  %v245_v60 = vsel %vm233_vm7, %v240_v51, %v244_v53 }
  0xeb   :  { %v1392_v28 = vpop.permute.xlu1 %1391 }
  0xec   :  { %v1405_v31 = vadd.f32 %v1589_v14, %v1389_v24  ;;  %vm1396_vm0 = vcmp.eq.s32.totalorder %v1392_v28, %v2253_v49  ;;  %v565_v24 = vsel %vm553_vm10, %v559_v5, %v563_v10  ;;  %vm1218_vm10 = vmand %vm1216_vm8, %vm2346_vm3 }
  0xed   :  { %vm1398_vm2 = vmand %vm1396_vm0, %vm2346_vm3  ;;  %vm1152_vm0 = vcmp.eq.s32.totalorder %v2327_v25, %v2253_v49 }
  0xee   :  { %v1588_v34 = vsel %vm1398_vm2, 1.0, %v2026_v52  ;;  %vm1168_vm2 = vcmp.eq.s32.totalorder %v2329_v26, %v2253_v49 }
  0xef   :  { %v1404_v35 = vadd.f32 %v1588_v34, %v1388_v8 }
  0xf0   :  { %v1408_v36 = vpop.permute.xlu1 %1407 }
  0xf1   :  { %vm1412_vm4 = vcmp.eq.s32.totalorder %v1408_v36, %v2253_v49  ;;  %v1887_v36 = vpack.c.bf16 %v688_v30, %v687_v29  ;;  %v803_v29 = vld [vmem:[%s2714_s16 + $0x10] sm:$0xff]  ;;  %v804_v30 = vld [vmem:[%s2714_s16 + $0x18] sm:$0xff] }
  0xf2   :  { %vm1414_vm5 = vmand %vm1412_vm4, %vm2346_vm3 }
  0xf3   :  { %v1590_v37 = vsel %vm1414_vm5, 1.0, %v2026_v52  ;;  %vm1154_vm4 = vmand %vm1152_vm0, %vm2346_vm3  ;;  %vm1184_vm5 = vcmp.eq.s32.totalorder %v2371_v43, %v2253_v49  ;;  %v1560_v43 = vld [vmem:[%s2720_s19] ss:$0 sm:$0xff] }
  0xf4   :  { %v2438_v38 = vadd.f32 %v1590_v37, %v1404_v35  ;;  %v1411_v39 = vpop.permute.xlu1 %1410 }
  0xf5   :  { %vm1413_vm1 = vcmp.eq.s32.totalorder %v1411_v39, %v2253_v49  ;;  %v689_v39 = vld [vmem:[%s2710_s14 + $0x20] sm:$0xff] }
  0xf6   :  { %vm1415_vm6 = vmand %vm1413_vm1, %vm2332_vm13  ;;  %vm234_vm13 = vcmp.eq.s32.totalorder %v2306_v15, 1 }
  0xf7   :  { %v1591_v42 = vsel %vm1415_vm6, 1.0, %v2026_v52  ;;  %v246_v58 = vsel %vm234_vm13, %v240_v51, %v244_v53  ;;  %v691_v53 = vld [vmem:[%s2710_s14 + $0x30] sm:$0xff]  ;;  %vm1170_vm1 = vmand %vm1168_vm2, %vm2346_vm3  ;;  %vm1200_vm13 = vcmp.eq.s32.totalorder %v2364_v40, %v2253_v49 }
  0xf8   :  { %v2444_v44 = vadd.f32 %v1591_v42, %v1405_v31  ;;  %v564_v31 = vsel %vm552_vm11, %v559_v5, %v563_v10  ;;  %v690_v42 = vld [vmem:[%s2710_s14 + $0x28] sm:$0xff]  ;;  %vm1186_vm6 = vmand %vm1184_vm5, %vm2346_vm3 }
  0xf9   :  { %v1891_v27 = vpack.c.bf16 %v690_v42, %v689_v39  ;;  %v1554_v39 = vld [vmem:[%s2717_s15] ss:$0 sm:$0xff]  ;;  %v1570_v26 = vsel %vm1186_vm6, 1.0, %v2026_v52  ;;  %vm1202_vm7 = vmand %vm1200_vm13, %vm2346_vm3 }
  0xfa   :  { %vm1234_vm11 = vmand %vm1232_vm9, %vm2346_vm3  ;;  %vm1515_vm3 = vcmask 523264  }
  0xfb   :  { %v1576_v3 = vsel %vm1234_vm11, 1.0, %v2026_v52 }
 0x162   :  { %v1695_v56 = vpop.f32.mrb[0].mxu0 }
 0x163   :  { %v195_v23 = vadd.f32 %v1695_v56, %v105_v54  ;;  %v189_v57 = vpop.f32.mrb[1].mxu0  ;;  %v693_v56 = vld [vmem:[%s2710_s14 + $0x40] sm:$0xff] }
 0x164   :  { %v190_v59 = vadd.f32 %v189_v57, %v104_v55 }
 0x165   :  { %v250_v62 = vadd.f32 %v246_v58, %v195_v23  ;;  %v694_v23 = vld [vmem:[%s2710_s14 + $0x48] sm:$0xff]  ;;  %v695_v58 = vld [vmem:[%s2710_s14 + $0x50] sm:$0xff] }
 0x166   :  { %v1698_v15 = vpop.f32.mrb[2].mxu0  ;;  %v249_v63 = vadd.f32 %v245_v60, %v190_v59  ;;  %v1899_v57 = vpack.c.bf16 %v694_v23, %v693_v56  ;;  %v696_v59 = vld [vmem:[%s2710_s14 + $0x58] sm:$0xff] }
 0x167   :  { %v205_v0 = vadd.f32 %v1698_v15, %v105_v54  ;;  %v199_v1 = vpop.f32.mrb[3].mxu0  ;;  %v1705_v16 = vpop.f32.mrb[0].mxu1  ;;  %v566_v54 = vsel %vm554_vm15, %v559_v5, %v563_v10  ;;  %v1903_v60 = vpack.c.bf16 %v696_v59, %v695_v58  ;;  %v919_v58 = vld [vmem:[%s2716_s18 + $0x30] sm:$0xff]  ;;  %v920_v59 = vld [vmem:[%s2716_s18 + $0x38] sm:$0xff] }
 0x168   :  { %v200_v6 = vadd.f32 %v199_v1, %v104_v55  ;;  %v386_v7 = vadd.f32 %v1705_v16, %v250_v62  ;;  %v366_v8 = vpop.f32.mrb[1].mxu1  ;;  %v698_v62 = vld [vmem:[%s2710_s14 + $0x68] sm:$0xff]  ;;  %v801_v16 = vld [vmem:[%s2714_s16] sm:$0xff] }
 0x169   :  { %v385_v17 = vadd.f32 %v366_v8, %v249_v63  ;;  %v252_v11 = vadd.f32 %v248_v2, %v205_v0  ;;  %v1907_v15 = vpack.c.bf16 %v698_v62, %v697_v61  ;;  %v699_v63 = vld [vmem:[%s2710_s14 + $0x70] sm:$0xff]  ;;  %v700_v0 = vld [vmem:[%s2710_s14 + $0x78] sm:$0xff]  ;;  %v802_v2 = vld [vmem:[%s2714_s16 + $0x8] sm:$0xff]  ;;  %v1935_v62 = vpack.c.bf16 %v920_v59, %v919_v58 }
 0x16a   :  { %v251_v12 = vadd.f32 %v247_v9, %v200_v6  ;;  %v1911_v1 = vpack.c.bf16 %v700_v0, %v699_v63  ;;  %v1915_v5 = vpack.c.bf16 %v802_v2, %v801_v16  ;;  %v1549_v6 = vld [vmem:[%s2715_s13] ss:$0 sm:$0xff]  ;;  %v922_v63 = vld [vmem:[%s2716_s18 + $0x48] sm:$0xff]  ;;  %v924_v16 = vld [vmem:[%s2716_s18 + $0x58] sm:$0xff] }
 0x16b   :  { %v1719_v18 = vpop.f32.mrb[4].mxu0 }
 0x16c   :  { %v524_v13 = vadd.f32 %v1719_v18, %v386_v7  ;;  %v504_v14 = vpop.f32.mrb[5].mxu0  ;;  %1916 = vmatprep.subr.bf16.mxu0 %v1915_v5 }
 0x16d   :  { %v523_v28 = vadd.f32 %v504_v14, %v385_v17  ;;  %1918 = vmatpush3.bf16.msra.mxu0 %v1915_v5  ;;  %v925_v5 = vld [vmem:[%s2716_s18 + $0x60] sm:$0xff] }
 0x16e   :  { %v2481_v32 = vadd.f32 %v565_v24, %v524_v13 }
 0x16f   :  { %v2483_v19 = vadd.f32 %v564_v31, %v523_v28  ;;  %v1708_v20 = vpop.f32.mrb[2].mxu1  ;;  %v1919_v31 = vpack.c.bf16 %v804_v30, %v803_v29 }
 0x170   :  { %v388_v34 = vadd.f32 %v1708_v20, %v252_v11  ;;  %v376_v35 = vpop.f32.mrb[3].mxu1  ;;  %v913_v20 = vld [vmem:[%s2716_s18] sm:$0xff] }
 0x171   :  { %v387_v37 = vadd.f32 %v376_v35, %v251_v12  ;;  %1731 = vmatprep.mubr.msk.f32.mxu1 %vm583_vm12, %v2483_v19  ;;  %1920 = vmatprep.subr.bf16.mxu0 %v1919_v31 }
 0x172   :  { %1732 = vmatmul.mubr.msk.f32.vlgmr.msra.gmra.mrb[4].mxu1 %vm583_vm12, %v2481_v32  ;;  %1922 = vmatpush3.bf16.msra.mxu0 %v1919_v31 }
 0x173   :  { %v1722_v45 = vpop.f32.mrb[6].mxu0  ;;  %1886 = vmatpush3.bf16.msra.mxu1 %v2452_v47  ;;  %v1895_v47 = vpack.c.bf16 %v692_v21, %v691_v53  ;;  %v917_v53 = vld [vmem:[%s2716_s18 + $0x20] sm:$0xff]  ;;  %v918_v21 = vld [vmem:[%s2716_s18 + $0x28] sm:$0xff] }
 0x174   :  { %v526_v46 = vadd.f32 %v1722_v45, %v388_v34  ;;  %v514_v48 = vpop.f32.mrb[7].mxu0  ;;  %1888 = vmatprep.subr.bf16.mxu1 %v1887_v36  ;;  %v914_v34 = vld [vmem:[%s2716_s18 + $0x8] sm:$0xff]  ;;  %v1931_v23 = vpack.c.bf16 %v918_v21, %v917_v53 }
 0x175   :  { %v525_v51 = vadd.f32 %v514_v48, %v387_v37  ;;  %v1923_v35 = vpack.c.bf16 %v914_v34, %v913_v20  ;;  %v916_v48 = vld [vmem:[%s2716_s18 + $0x18] sm:$0xff] }
 0x176   :  { %v2504_v55 = vadd.f32 %v567_v50, %v526_v46  ;;  %v915_v46 = vld [vmem:[%s2716_s18 + $0x10] sm:$0xff] }
 0x177   :  { %v2506_v22 = vadd.f32 %v566_v54, %v525_v51  ;;  %1890 = vmatpush3.bf16.msra.mxu1 %v1887_v36  ;;  %1924 = vmatprep.subr.bf16.mxu0 %v1923_v35  ;;  %v1927_v51 = vpack.c.bf16 %v916_v48, %v915_v46  ;;  %v1566_v46 = vsel %vm1154_vm4, 1.0, %v2026_v52  ;;  %v1568_v48 = vsel %vm1170_vm1, 1.0, %v2026_v52 }
 0x178   :  { %1892 = vmatprep.subr.bf16.mxu1 %v1891_v27  ;;  %v1176_v21 = vadd.f32 %v1568_v48, %v1566_v46 }
 0x179   :  { %1734 = vmatprep.mubr.msk.f32.mxu1 %vm583_vm12, %v2506_v22 }
 0x17a   :  { %1735 = vmatmul.mubr.msk.f32.gmra.mrb[6].mxu1 %vm583_vm12, %v2504_v55  ;;  %v1192_v40 = vadd.f32 %v1570_v26, %v1176_v21 }
 0x17b   :  { %1894 = vmatpush3.bf16.msra.mxu1 %v1891_v27 }
 0x17c   :  { %1896 = vmatprep.subr.bf16.mxu1 %v1895_v47 }
 0x17f   :  { %1898 = vmatpush3.bf16.msra.mxu1 %v1895_v47 }
 0x180   :  { %1900 = vmatprep.subr.bf16.mxu1 %v1899_v57 }
 0x183   :  { %1902 = vmatpush3.bf16.msra.mxu1 %v1899_v57 }
 0x184   :  { %1904 = vmatprep.subr.bf16.mxu1 %v1903_v60 }
 0x187   :  { %1906 = vmatpush3.bf16.msra.mxu1 %v1903_v60 }
 0x188   :  { %1908 = vmatprep.subr.bf16.mxu1 %v1907_v15 }
 0x18b   :  { %1910 = vmatpush3.bf16.msra.mxu1 %v1907_v15  ;;  %v921_v15 = vld [vmem:[%s2716_s18 + $0x40] sm:$0xff] }
 0x18c   :  { %1912 = vmatprep.subr.bf16.mxu1 %v1911_v1  ;;  %v1939_v0 = vpack.c.bf16 %v922_v63, %v921_v15 }
 0x18f   :  { %1914 = vmatpush3.bf16.msra.mxu1 %v1911_v1  ;;  %v923_v1 = vld [vmem:[%s2716_s18 + $0x50] sm:$0xff] }
 0x190   :  { %v1943_v2 = vpack.c.bf16 %v924_v16, %v923_v1 }
 0x245   :  { %v1733_v7 = vpop.f32.mrb[4].mxu1 }
 0x246   :  { %v668_v8 = vadd.f32 %v1733_v7, %v1549_v6  ;;  %v662_v9 = vpop.f32.mrb[5].mxu1 }
 0x247   :  { %v663_v10 = vadd.f32 %v1549_v6, %v662_v9  ;;  %v928_v9 = vld [vmem:[%s2716_s18 + $0x78] sm:$0xff] }
 0x248   :  { %v682_v11 = vmax.f32 %v668_v8, 0.0  ;;  %v927_v8 = vld [vmem:[%s2716_s18 + $0x70] sm:$0xff] }
 0x249   :  { %v681_v17 = vmax.f32 %v663_v10, 0.0  ;;  %v1951_v10 = vpack.c.bf16 %v928_v9, %v927_v8 }
 0x24b   :  { %1769 = vmatprep.mubr.f32.mxu1 %v681_v17  ;;  %v1029_v17 = vld [vmem:[%s2718_s20] sm:$0xff] }
 0x24c   :  { %1770 = vmatmul.mubr.f32.vlgmr.msra.gmra.mrb[8].mxu1 %v682_v11  ;;  %v1030_v11 = vld [vmem:[%s2718_s20 + $0x8] sm:$0xff] }
 0x24d   :  { %v1736_v12 = vpop.f32.mrb[6].mxu1 }
 0x24e   :  { %v678_v18 = vadd.f32 %v1736_v12, %v1549_v6  ;;  %v672_v13 = vpop.f32.mrb[7].mxu1  ;;  %v1955_v12 = vpack.c.bf16 %v1030_v11, %v1029_v17 }
 0x24f   :  { %v673_v14 = vadd.f32 %v1549_v6, %v672_v13  ;;  %v926_v6 = vld [vmem:[%s2716_s18 + $0x68] sm:$0xff] }
 0x250   :  { %v684_v28 = vmax.f32 %v678_v18, 0.0  ;;  %v1947_v7 = vpack.c.bf16 %v926_v6, %v925_v5  ;;  %1971 = vmatprep.subr.bf16.mxu1 %v1955_v12  ;;  %v1555_v18 = vld [vmem:[%s2719_s17] ss:$0 sm:$0xff] }
 0x251   :  { %v683_v24 = vmax.f32 %v673_v14, 0.0  ;;  %1973 = vmatpush3.bf16.msra.mxu1 %v1955_v12 }
 0x253   :  { %1772 = vmatprep.mubr.f32.mxu1 %v683_v24 }
 0x254   :  { %1773 = vmatmul.mubr.f32.gmra.mrb[10].mxu1 %v684_v28 }
 0x31f   :  { %v1771_v36 = vpop.f32.mrb[8].mxu1 }
 0x320   :  { %v787_v37 = vadd.f32 %v1771_v36, %v2481_v32  ;;  %v767_v42 = vpop.f32.mrb[9].mxu1 }
 0x321   :  { %v786_v45 = vadd.f32 %v767_v42, %v2483_v19  ;;  %v1032_v42 = vld [vmem:[%s2718_s20 + $0x18] sm:$0xff] }
 0x322   :  { %v2570_v50 = vadd.f32 %v1554_v39, %v787_v37 }
 0x323   :  { %v2568_v27 = vadd.f32 %v1554_v39, %v786_v45 }
 0x325   :  { %1783 = vmatprep.mubr.msk.f32.mxu0 %vm583_vm12, %v2568_v27 }
 0x326   :  { %1784 = vmatmul.mubr.msk.f32.vlgmr.msra.gmra.mrb[8].mxu0 %vm583_vm12, %v2570_v50 }
 0x327   :  { %v1774_v54 = vpop.f32.mrb[10].mxu1  ;;  %1926 = vmatpush3.bf16.msra.mxu0 %v1923_v35 }
 0x328   :  { %v789_v47 = vadd.f32 %v1774_v54, %v2504_v55  ;;  %v777_v56 = vpop.f32.mrb[11].mxu1  ;;  %1928 = vmatprep.subr.bf16.mxu0 %v1927_v51 }
 0x329   :  { %v788_v57 = vadd.f32 %v777_v56, %v2506_v22  ;;  %v1572_v56 = vsel %vm1202_vm7, 1.0, %v2026_v52 }
 0x32a   :  { %v2592_v61 = vadd.f32 %v1554_v39, %v789_v47 }
 0x32b   :  { %v2590_v60 = vadd.f32 %v1554_v39, %v788_v57  ;;  %1930 = vmatpush3.bf16.msra.mxu0 %v1927_v51  ;;  %v1031_v39 = vld [vmem:[%s2718_s20 + $0x10] sm:$0xff] }
 0x32c   :  { %1932 = vmatprep.subr.bf16.mxu0 %v1931_v23  ;;  %v1959_v45 = vpack.c.bf16 %v1032_v42, %v1031_v39 }
 0x32d   :  { %1786 = vmatprep.mubr.msk.f32.mxu0 %vm583_vm12, %v2590_v60 }
 0x32e   :  { %1787 = vmatmul.mubr.msk.f32.gmra.mrb[10].mxu0 %vm583_vm12, %v2592_v61  ;;  %1972 = vmatprep.subr.bf16.mxu1 %v1959_v45 }
 0x32f   :  { %1934 = vmatpush3.bf16.msra.mxu0 %v1931_v23  ;;  %1974 = vmatpush3.bf16.msra.mxu1 %v1959_v45  ;;  %v1208_v23 = vadd.f32 %v1572_v56, %v1192_v40 }
 0x330   :  { %1936 = vmatprep.subr.bf16.mxu0 %v1935_v62 }
 0x333   :  { %1938 = vmatpush3.bf16.msra.mxu0 %v1935_v62 }
 0x334   :  { %1940 = vmatprep.subr.bf16.mxu0 %v1939_v0 }
 0x337   :  { %1942 = vmatpush3.bf16.msra.mxu0 %v1939_v0 }
 0x338   :  { %1944 = vmatprep.subr.bf16.mxu0 %v1943_v2 }
 0x33b   :  { %1946 = vmatpush3.bf16.msra.mxu0 %v1943_v2 }
 0x33c   :  { %1948 = vmatprep.subr.bf16.mxu0 %v1947_v7 }
 0x33f   :  { %1950 = vmatpush3.bf16.msra.mxu0 %v1947_v7 }
 0x340   :  { %1952 = vmatprep.subr.bf16.mxu0 %v1951_v10 }
 0x343   :  { %1954 = vmatpush3.bf16.msra.mxu0 %v1951_v10 }
 0x344   :  { %1956 = vmatprep.subr.bf16.mxu0 %v1955_v12 }
 0x3f9   :  { %v1785_v13 = vpop.f32.mrb[8].mxu0 }
 0x3fa   :  { %v896_v14 = vadd.f32 %v1785_v13, %v1555_v18  ;;  %v890_v24 = vpop.f32.mrb[9].mxu0 }
 0x3fb   :  { %v891_v28 = vadd.f32 %v1555_v18, %v890_v24 }
 0x3fc   :  { %v910_v30 = vmax.f32 %v896_v14, 0.0 }
 0x3fd   :  { %v909_v29 = vmax.f32 %v891_v28, 0.0 }
 0x3ff   :  { %1821 = vmatprep.mubr.f32.mxu0 %v909_v29 }
 0x400   :  { %1822 = vmatmul.mubr.f32.vlgmr.msra.gmra.mrb[12].mxu0 %v910_v30 }
 0x401   :  { %v1788_v31 = vpop.f32.mrb[10].mxu0  ;;  %1958 = vmatpush3.bf16.msra.mxu0 %v1955_v12 }
 0x402   :  { %v906_v20 = vadd.f32 %v1788_v31, %v1555_v18  ;;  %v900_v34 = vpop.f32.mrb[11].mxu0  ;;  %1960 = vmatprep.subr.bf16.mxu0 %v1959_v45 }
 0x403   :  { %v901_v35 = vadd.f32 %v1555_v18, %v900_v34 }
 0x404   :  { %v912_v37 = vmax.f32 %v906_v20, 0.0 }
 0x405   :  { %v911_v36 = vmax.f32 %v901_v35, 0.0  ;;  %1962 = vmatpush3.bf16.msra.mxu0 %v1959_v45 }
 0x407   :  { %1824 = vmatprep.mubr.f32.mxu0 %v911_v36 }
 0x408   :  { %1825 = vmatmul.mubr.f32.gmra.mrb[14].mxu0 %v912_v37 }
 0x4d3   :  { %v1823_v25 = vpop.f32.mrb[12].mxu0 }
 0x4d4   :  { %v1015_v51 = vadd.f32 %v1823_v25, %v2570_v50  ;;  %v995_v53 = vpop.f32.mrb[13].mxu0 }
 0x4d5   :  { %v1014_v54 = vadd.f32 %v995_v53, %v2568_v27  ;;  %v1574_v27 = vsel %vm1218_vm10, 1.0, %v2026_v52 }
 0x4d6   :  { %v1026_v50 = vadd.f32 %v1560_v43, %v1015_v51  ;;  %v1224_v59 = vadd.f32 %v1574_v27, %v1208_v23 }
 0x4d7   :  { %v1025_v47 = vadd.f32 %v1560_v43, %v1014_v54 }
 0x4d8   :  { %v1240_v63 = vadd.f32 %v1576_v3, %v1224_v59 }
 0x4d9   :  { %1835 = vmatprep.mubr.msk.f32.mxu0 %vm583_vm12, %v1025_v47 }
 0x4da   :  { %1836 = vmatmul.mubr.msk.f32.vlgmr.msra.gmra.mrb[16].mxu0 %vm583_vm12, %v1026_v50 }
 0x4db   :  { %v1826_v41 = vpop.f32.mrb[14].mxu0 }
 0x4dc   :  { %v1017_v57 = vadd.f32 %v1826_v41, %v2592_v61  ;;  %v1005_v58 = vpop.f32.mrb[15].mxu0 }
 0x4dd   :  { %v1016_v49 = vadd.f32 %v1005_v58, %v2590_v60 }
 0x4de   :  { %v1028_v15 = vadd.f32 %v1560_v43, %v1017_v57 }
 0x4df   :  { %v1027_v62 = vadd.f32 %v1560_v43, %v1016_v49 }
 0x4e1   :  { %1838 = vmatprep.mubr.msk.f32.mxu1 %vm583_vm12, %v1027_v62 }
 0x4e2   :  { %1839 = vmatmul.mubr.msk.f32.vlgmr.msra.gmra.mrb[12].mxu1 %vm583_vm12, %v1028_v15 }
 0x4e3   :  { %1845 = vmatprep.mubr.msk.f32.mxu1 %vm1242_vm14, %v1240_v63 }
 0x5ad   :  { %v1837_v61 = vpop.f32.mrb[16].mxu0 }
 0x5ae   :  { %v1124_v0 = vadd.f32 %v1837_v61, %v1561_v33  ;;  %v1118_v60 = vpop.f32.mrb[17].mxu0 }
 0x5af   :  { %v1119_v1 = vadd.f32 %v1561_v33, %v1118_v60 }
 0x5b1   :  { %v1963_v52 = vpack.c.bf16 %v1124_v0, %v1119_v1 }
 0x5b3   :  { %1964 = vmatprep.subr.bf16.mxu1 %v1963_v52 }
 0x5b4   :  { %1966 = vmatpush3.bf16.msra.mxu1 %v1963_v52 }
 0x5b5   :  { %v1840_v16 = vpop.f32.mrb[12].mxu1 }
 0x5b6   :  { %v1134_v2 = vadd.f32 %v1840_v16, %v1561_v33  ;;  %v1128_v5 = vpop.f32.mrb[13].mxu1 }
 0x5b7   :  { %v1129_v6 = vadd.f32 %v1561_v33, %v1128_v5  ;;  %1846 = vmatmul.mubr.msk.f32.vlgmr.msra.gmra.mrb[14].mxu1 %vm1242_vm14, %v2404_v4 }
 0x5b8   :  { %1852 = vmatprep.mubr.msk.f32.mxu1 %vm1242_vm14, %v2438_v38 }
 0x5b9   :  { %v1967_v7 = vpack.c.bf16 %v1134_v2, %v1129_v6 }
 0x5bb   :  { %1968 = vmatprep.subr.bf16.mxu1 %v1967_v7 }
 0x5bc   :  { %1970 = vmatpush3.bf16.msra.mxu1 %v1967_v7 }
 0x5bf   :  { %1853 = vmatmul.mubr.msk.f32.vlgmr.msra.gmra.mrb[16].mxu1 %vm1242_vm14, %v2444_v44 }
 0x68a   :  { %v1847_v8 = vpop.f32.mrb[14].mxu1 }
 0x68b   :  { %v1315_v9 = vpop.f32.mrb[15].mxu1  ;;  %v1325_v4 = vadd.f32 %v1847_v8, %v2481_v32 }
 0x68c   :  { %v1324_v38 = vadd.f32 %v1315_v9, %v2483_v19 }
 0x692   :  { %v1854_v10 = vpop.f32.mrb[16].mxu1 }
 0x693   :  { %v1504_v17 = vadd.f32 %v1854_v10, %v2504_v55  ;;  %v1494_v11 = vpop.f32.mrb[17].mxu1 }
 0x694   :  { %v1503_v12 = vadd.f32 %v1494_v11, %v2506_v22 }
 0x695   :  { %1509 = vrot.lane.b32.xlu1 %v1504_v17, %s2027_s21 }
 0x696   :  { %1507 = vrot.lane.b32.xlu0 %v1503_v12, %s2027_s21 }
 0x707   :  { %v1510_v18 = vpop.permute.xlu1 %1509 }
 0x708   :  { %v1514_v13 = vsel %vm583_vm12, %v1325_v4, %v1510_v18  ;;  %v1508_v44 = vpop.permute.xlu0 %1507 }
 0x709   :  { %1517 = vst.msk [vmem:[%s2722_s22 + $0x8] sm:$0xff] %vm1515_vm3, %v1514_v13  ;;  %v1513_v55 = vsel %vm583_vm12, %v1324_v38, %v1508_v44 }
 0x70a   :  { %1516 = vst.msk [vmem:[%s2722_s22] sm:$0xff] %vm1515_vm3, %v1513_v55 }

</bundles_post_ra>
